<compile_context>
chip_gen: v7x
topology: tpu7x:2x2x1
jax: 0.10.0
libtpu: 0.0.40
codegen_flags: <defaults>
</compile_context>

<pallas_src>
import functools

import jax
import jax.numpy as jnp
from jax.experimental import pallas as pl
from jax.experimental.pallas import tpu as pltpu

LANE = 128
SUBLANE = 8


def _round_up(n, m):
    return ((n + m - 1) // m) * m


def _pad2(x, rows, cols):
    """Zero-pad a 2-D array up to (rows, cols)."""
    return jnp.pad(x, ((0, rows - x.shape[0]), (0, cols - x.shape[1])))


def _ampstyle_kernel(n_style, n_dense, skip_style, *refs):
    """Fused forward on one batch tile.  All feature dims are lane-padded."""
    refs = list(refs)
    out_ref = refs.pop()          # output ref is last
    obs_ref = refs.pop(0)
    lat_ref = refs.pop(0)

    def mm(act_f32, w_ref):
        # bf16 MXU inputs, f32 accumulation.
        return jnp.dot(act_f32.astype(jnp.bfloat16), w_ref[...],
                       preferred_element_type=jnp.float32)

    if skip_style:
        style = lat_ref[...]
    else:
        h = lat_ref[...]
        for _ in range(n_style):
            w_ref = refs.pop(0)
            b_ref = refs.pop(0)
            h = jnp.maximum(mm(h, w_ref) + b_ref[...], 0.0)
        w_ref = refs.pop(0)
        b_ref = refs.pop(0)
        style = jnp.tanh(mm(h, w_ref) + b_ref[...])

    # First main dense layer: w_d0 pre-split into obs-part / style-part so the
    # lane-axis concat([obs, style]) never materializes.
    w_obs_ref = refs.pop(0)
    w_sty_ref = refs.pop(0)
    b0_ref = refs.pop(0)
    h = mm(obs_ref[...], w_obs_ref) + mm(style, w_sty_ref) + b0_ref[...]
    h = jnp.maximum(h, 0.0)

    for _ in range(n_dense - 1):
        w_ref = refs.pop(0)
        b_ref = refs.pop(0)
        h = jnp.maximum(mm(h, w_ref) + b_ref[...], 0.0)

    out_ref[...] = h.astype(out_ref.dtype)


def amp_style_cat_net_forward(obs, latent, params, *, skip_style=False,
                              batch_tile=1024):
    """AMPStyleCatNet1 forward in one Pallas kernel.

    `batch_tile` is the batch rows per grid step.  1024 rows of lane-padded f32
    activations is ~0.5 MiB per buffered tensor, comfortably inside v5e's 16 MiB
    scoped VMEM and v7x's 32 MiB default; raise it per-generation if desired.
    """
    batch, obs_size = obs.shape
    lat_size = latent.shape[1]
    n_style = sum(1 for k in params if k.startswith("w_s") and k != "w_sd")
    n_dense = sum(1 for k in params if k.startswith("w_d"))
    style_dim = params["w_sd"].shape[1]
    out_dim = params[f"w_d{n_dense - 1}"].shape[1]

    if skip_style and lat_size != style_dim:
        raise ValueError(
            "skip_style=True requires ase_latent_size == style_dim "
            f"(got {lat_size} vs {style_dim}); w_d0 expects obs_size + style_dim "
            "input features.")

    # ---- lane padding targets (feature dims -> multiples of 128) ----
    op = _round_up(obs_size, LANE)
    lp = _round_up(lat_size, LANE)
    sp = _round_up(style_dim, LANE)

    def wpad(w, kp, np_):
        return _pad2(w, kp, np_).astype(jnp.bfloat16)

    def bpad(b, np_):
        return _pad2(b.reshape(1, -1).astype(jnp.float32), 1, np_)

    args, specs = [], []
    weight_bytes = 0
    flops = 0

    def add_weight(w, kp, np_):
        nonlocal weight_bytes
        args.append(wpad(w, kp, np_))
        specs.append(pl.BlockSpec((kp, np_), lambda i: (0, 0)))
        weight_bytes += kp * np_ * 2

    def add_bias(b, np_):
        nonlocal weight_bytes
        args.append(bpad(b, np_))
        specs.append(pl.BlockSpec((1, np_), lambda i: (0, 0)))
        weight_bytes += np_ * 4

    # ---- batch tiling ----
    bt = min(_round_up(batch_tile, SUBLANE), _round_up(batch, SUBLANE))
    batch_p = _round_up(batch, bt)
    obs_p = _pad2(obs.astype(jnp.float32), batch_p, op)
    lat_p = _pad2(latent.astype(jnp.float32), batch_p, lp)

    args += [obs_p, lat_p]
    specs += [pl.BlockSpec((bt, op), lambda i: (i, 0)),
              pl.BlockSpec((bt, lp), lambda i: (i, 0))]

    # ---- style MLP + style dense (omitted entirely when skip_style) ----
    if not skip_style:
        kp = lp
        for i in range(n_style):
            np_ = _round_up(params[f"w_s{i}"].shape[1], LANE)
            add_weight(params[f"w_s{i}"], kp, np_)
            add_bias(params[f"b_s{i}"], np_)
            flops += 2 * batch_p * kp * np_
            kp = np_
        add_weight(params["w_sd"], kp, sp)
        add_bias(params["b_sd"], sp)
        flops += 2 * batch_p * kp * sp

    # ---- main dense layers (w_d0 split into obs / style parts) ----
    w_d0 = params["w_d0"]
    u0p = _round_up(w_d0.shape[1], LANE)
    add_weight(w_d0[:obs_size], op, u0p)      # obs part
    add_weight(w_d0[obs_size:], sp, u0p)      # style part
    add_bias(params["b_d0"], u0p)
    flops += 2 * batch_p * (op + sp) * u0p

    kp = u0p
    for i in range(1, n_dense):
        np_ = _round_up(params[f"w_d{i}"].shape[1], LANE)
        add_weight(params[f"w_d{i}"], kp, np_)
        add_bias(params[f"b_d{i}"], np_)
        flops += 2 * batch_p * kp * np_
        kp = np_
    out_p_dim = kp

    bytes_accessed = ((obs_p.size + lat_p.size + batch_p * out_p_dim) * 4
                      + weight_bytes)
    cost = pl.CostEstimate(
        flops=flops,
        transcendentals=0 if skip_style else batch_p * sp,
        bytes_accessed=bytes_accessed)

    out_padded = pl.pallas_call(
        functools.partial(_ampstyle_kernel, n_style, n_dense, skip_style),
        out_shape=jax.ShapeDtypeStruct((batch_p, out_p_dim), jnp.float32),
        grid=(batch_p // bt,),
        in_specs=specs,
        out_specs=pl.BlockSpec((bt, out_p_dim), lambda i: (i, 0)),
        compiler_params=pltpu.CompilerParams(
            dimension_semantics=("parallel",)),
        cost_estimate=cost,
    )(*args)

    # Slice back to the true (batch, out_dim) result.
    return out_padded[:batch, :out_dim]


def init_params(key, obs_size, ase_latent_size, units, style_units, style_dim):
    """Deterministic init mirroring AMPStyleCatNet1.init_params.

    The module's `_initializer` is applied to every Linear weight (concrete
    choice here: uniform fan-in), biases are zero, and the style_dense weight is
    re-initialized uniform(-1, 1).  Weights are stored as (in_features,
    out_features) so the kernel computes x @ W + b (== PyTorch x @ W.T + b).
    """
    params = {}

    def linear(k, in_f, out_f, scale=None):
        if scale is None:
            scale = 1.0 / jnp.sqrt(jnp.float32(in_f))
        w = jax.random.uniform(k, (in_f, out_f), jnp.float32,
                               minval=-scale, maxval=scale)
        b = jnp.zeros((1, out_f), jnp.float32)
        return w, b

    n_keys = len(style_units) + 1 + len(units)
    keys = jax.random.split(key, n_keys)
    kidx = 0

    in_f = ase_latent_size
    for i, u in enumerate(style_units):
        params[f"w_s{i}"], params[f"b_s{i}"] = linear(keys[kidx], in_f, u)
        kidx += 1
        in_f = u

    # style dense: uniform(-1, 1), bias zero
    params["w_sd"], params["b_sd"] = linear(keys[kidx], style_units[-1],
                                            style_dim, scale=1.0)
    kidx += 1

    in_f = obs_size + style_dim
    for i, u in enumerate(units):
        params[f"w_d{i}"], params[f"b_d{i}"] = linear(keys[kidx], in_f, u)
        kidx += 1
        in_f = u

    return params


def reference_forward(obs, latent, params, *, skip_style=False, mimic_bf16=False):
    """Pure-JAX reference.  mimic_bf16=True matches the kernel's MXU dtype."""
    n_style = sum(1 for k in params if k.startswith("w_s") and k != "w_sd")
    n_dense = sum(1 for k in params if k.startswith("w_d"))

    def mm(a, w):
        if mimic_bf16:
            return jnp.dot(a.astype(jnp.bfloat16), w.astype(jnp.bfloat16),
                           preferred_element_type=jnp.float32)
        return a @ w

    if skip_style:
        style = latent
    else:
        h = latent
        for i in range(n_style):
            h = jnp.maximum(mm(h, params[f"w_s{i}"]) + params[f"b_s{i}"], 0.0)
        style = jnp.tanh(mm(h, params["w_sd"]) + params["b_sd"])
    h = jnp.concatenate([obs, style], axis=-1)
    for i in range(n_dense):
        h = jnp.maximum(mm(h, params[f"w_d{i}"]) + params[f"b_d{i}"], 0.0)
    return h


if __name__ == "__main__":
    # Small, module-consistent shapes (ase_latent_size == style_dim so the
    # skip_style path is also exercisable, matching the module's contract).
    batch = 8
    obs_size = 16
    ase_latent_size = 16
    style_units = (32, 32)
    style_dim = 16
    units = (64, 32)

    key = jax.random.PRNGKey(0)
    k_obs, k_lat, k_par = jax.random.split(key, 3)

    obs = jax.random.normal(k_obs, (batch, obs_size), jnp.float32)
    latent = jax.random.normal(k_lat, (batch, ase_latent_size), jnp.float32)
    params = init_params(k_par, obs_size, ase_latent_size, units,
                         style_units, style_dim)

    # TODO(synk): activation is fixed to ReLU and the initializer to uniform
    # fan-in; the PyTorch module takes these as arbitrary callables.
    for skip in (False, True):
        out = amp_style_cat_net_forward(obs, latent, params, skip_style=skip)
        out = jax.block_until_ready(out)
        assert out.shape == (batch, units[-1])

        ref16 = reference_forward(obs, latent, params, skip_style=skip,
                                  mimic_bf16=True)
        ref32 = reference_forward(obs, latent, params, skip_style=skip)
        # Tight match vs a reference using the same bf16 MXU inputs...
        assert jnp.allclose(out, ref16, atol=2e-3, rtol=2e-3), "bf16-ref mismatch"
        # ...and a loose match vs the full-f32 module-faithful reference.
        assert jnp.allclose(out, ref32, atol=5e-2, rtol=5e-2), "f32-ref mismatch"

    print("KERNEL_OK")
</pallas_src>

<mosaic_0001>
module attributes {stable_mosaic.version = 11 : i64} {
  func.func @_ampstyle_kernel(%arg0: i32, %arg1: memref<8x128xf32, #tpu.memory_space<vmem>>, %arg2: memref<8x128xf32, #tpu.memory_space<vmem>>, %arg3: memref<128x128xbf16, #tpu.memory_space<vmem>>, %arg4: memref<1x128xf32, #tpu.memory_space<vmem>>, %arg5: memref<128x128xbf16, #tpu.memory_space<vmem>>, %arg6: memref<1x128xf32, #tpu.memory_space<vmem>>, %arg7: memref<128x128xbf16, #tpu.memory_space<vmem>>, %arg8: memref<1x128xf32, #tpu.memory_space<vmem>>, %arg9: memref<128x128xbf16, #tpu.memory_space<vmem>>, %arg10: memref<128x128xbf16, #tpu.memory_space<vmem>>, %arg11: memref<1x128xf32, #tpu.memory_space<vmem>>, %arg12: memref<128x128xbf16, #tpu.memory_space<vmem>>, %arg13: memref<1x128xf32, #tpu.memory_space<vmem>>, %arg14: memref<8x128xf32, #tpu.memory_space<vmem>>) attributes {dimension_semantics = [#tpu.dimension_semantics<parallel>], iteration_bounds = array<i64: 1>, scalar_prefetch = 0 : i64, scratch_operands = 0 : i64, tpu.core_type = #tpu.core_type<tc>, window_params = [{transform_indices = @transform_0, window_bounds = array<i64: 8, 128>}, {transform_indices = @transform_1, window_bounds = array<i64: 8, 128>}, {pipeline_mode = #tpu.pipeline_mode<synchronous>, transform_indices = @transform_2, window_bounds = array<i64: 128, 128>}, {pipeline_mode = #tpu.pipeline_mode<synchronous>, transform_indices = @transform_3, window_bounds = array<i64: 1, 128>}, {pipeline_mode = #tpu.pipeline_mode<synchronous>, transform_indices = @transform_4, window_bounds = array<i64: 128, 128>}, {pipeline_mode = #tpu.pipeline_mode<synchronous>, transform_indices = @transform_5, window_bounds = array<i64: 1, 128>}, {pipeline_mode = #tpu.pipeline_mode<synchronous>, transform_indices = @transform_6, window_bounds = array<i64: 128, 128>}, {pipeline_mode = #tpu.pipeline_mode<synchronous>, transform_indices = @transform_7, window_bounds = array<i64: 1, 128>}, {pipeline_mode = #tpu.pipeline_mode<synchronous>, transform_indices = @transform_8, window_bounds = array<i64: 128, 128>}, {pipeline_mode = #tpu.pipeline_mode<synchronous>, transform_indices = @transform_9, window_bounds = array<i64: 128, 128>}, {pipeline_mode = #tpu.pipeline_mode<synchronous>, transform_indices = @transform_10, window_bounds = array<i64: 1, 128>}, {pipeline_mode = #tpu.pipeline_mode<synchronous>, transform_indices = @transform_11, window_bounds = array<i64: 128, 128>}, {pipeline_mode = #tpu.pipeline_mode<synchronous>, transform_indices = @transform_12, window_bounds = array<i64: 1, 128>}, {transform_indices = @transform_13, window_bounds = array<i64: 8, 128>}]} {
    %c0 = arith.constant 0 : index
    %c0_0 = arith.constant 0 : index
    %0 = vector.load %arg2[%c0, %c0_0] : memref<8x128xf32, #tpu.memory_space<vmem>>, vector<8x128xf32>
    %1 = arith.truncf %0 : vector<8x128xf32> to vector<8x128xbf16>
    %c0_1 = arith.constant 0 : index
    %c0_2 = arith.constant 0 : index
    %2 = vector.load %arg3[%c0_1, %c0_2] : memref<128x128xbf16, #tpu.memory_space<vmem>>, vector<128x128xbf16>
    %cst = arith.constant dense<0.000000e+00> : vector<8x128xf32>
    %3 = tpu.matmul %1, %2, %cst {dimension_numbers = #tpu.dot_dimension_numbers<[1], [0], [0], [1], [0, 0, 1, 1], [], []>} : vector<8x128xbf16>, vector<128x128xbf16>, vector<8x128xf32> -> vector<8x128xf32>
    %c0_3 = arith.constant 0 : index
    %c0_4 = arith.constant 0 : index
    %4 = vector.load %arg4[%c0_3, %c0_4] : memref<1x128xf32, #tpu.memory_space<vmem>>, vector<1x128xf32>
    %5 = vector.broadcast %4 : vector<1x128xf32> to vector<8x128xf32>
    %6 = arith.addf %3, %5 : vector<8x128xf32>
    %cst_5 = arith.constant 0.000000e+00 : f32
    %7 = vector.broadcast %cst_5 : f32 to vector<8x128xf32>
    %8 = arith.maximumf %6, %7 : vector<8x128xf32>
    %9 = arith.truncf %8 : vector<8x128xf32> to vector<8x128xbf16>
    %c0_6 = arith.constant 0 : index
    %c0_7 = arith.constant 0 : index
    %10 = vector.load %arg5[%c0_6, %c0_7] : memref<128x128xbf16, #tpu.memory_space<vmem>>, vector<128x128xbf16>
    %cst_8 = arith.constant dense<0.000000e+00> : vector<8x128xf32>
    %11 = tpu.matmul %9, %10, %cst_8 {dimension_numbers = #tpu.dot_dimension_numbers<[1], [0], [0], [1], [0, 0, 1, 1], [], []>} : vector<8x128xbf16>, vector<128x128xbf16>, vector<8x128xf32> -> vector<8x128xf32>
    %c0_9 = arith.constant 0 : index
    %c0_10 = arith.constant 0 : index
    %12 = vector.load %arg6[%c0_9, %c0_10] : memref<1x128xf32, #tpu.memory_space<vmem>>, vector<1x128xf32>
    %13 = vector.broadcast %12 : vector<1x128xf32> to vector<8x128xf32>
    %14 = arith.addf %11, %13 : vector<8x128xf32>
    %cst_11 = arith.constant 0.000000e+00 : f32
    %15 = vector.broadcast %cst_11 : f32 to vector<8x128xf32>
    %16 = arith.maximumf %14, %15 : vector<8x128xf32>
    %17 = arith.truncf %16 : vector<8x128xf32> to vector<8x128xbf16>
    %c0_12 = arith.constant 0 : index
    %c0_13 = arith.constant 0 : index
    %18 = vector.load %arg7[%c0_12, %c0_13] : memref<128x128xbf16, #tpu.memory_space<vmem>>, vector<128x128xbf16>
    %cst_14 = arith.constant dense<0.000000e+00> : vector<8x128xf32>
    %19 = tpu.matmul %17, %18, %cst_14 {dimension_numbers = #tpu.dot_dimension_numbers<[1], [0], [0], [1], [0, 0, 1, 1], [], []>} : vector<8x128xbf16>, vector<128x128xbf16>, vector<8x128xf32> -> vector<8x128xf32>
    %c0_15 = arith.constant 0 : index
    %c0_16 = arith.constant 0 : index
    %20 = vector.load %arg8[%c0_15, %c0_16] : memref<1x128xf32, #tpu.memory_space<vmem>>, vector<1x128xf32>
    %21 = vector.broadcast %20 : vector<1x128xf32> to vector<8x128xf32>
    %22 = arith.addf %19, %21 : vector<8x128xf32>
    %23 = math.tanh %22 : vector<8x128xf32>
    %c0_17 = arith.constant 0 : index
    %c0_18 = arith.constant 0 : index
    %24 = vector.load %arg1[%c0_17, %c0_18] : memref<8x128xf32, #tpu.memory_space<vmem>>, vector<8x128xf32>
    %25 = arith.truncf %24 : vector<8x128xf32> to vector<8x128xbf16>
    %c0_19 = arith.constant 0 : index
    %c0_20 = arith.constant 0 : index
    %26 = vector.load %arg9[%c0_19, %c0_20] : memref<128x128xbf16, #tpu.memory_space<vmem>>, vector<128x128xbf16>
    %cst_21 = arith.constant dense<0.000000e+00> : vector<8x128xf32>
    %27 = tpu.matmul %25, %26, %cst_21 {dimension_numbers = #tpu.dot_dimension_numbers<[1], [0], [0], [1], [0, 0, 1, 1], [], []>} : vector<8x128xbf16>, vector<128x128xbf16>, vector<8x128xf32> -> vector<8x128xf32>
    %28 = arith.truncf %23 : vector<8x128xf32> to vector<8x128xbf16>
    %c0_22 = arith.constant 0 : index
    %c0_23 = arith.constant 0 : index
    %29 = vector.load %arg10[%c0_22, %c0_23] : memref<128x128xbf16, #tpu.memory_space<vmem>>, vector<128x128xbf16>
    %cst_24 = arith.constant dense<0.000000e+00> : vector<8x128xf32>
    %30 = tpu.matmul %28, %29, %cst_24 {dimension_numbers = #tpu.dot_dimension_numbers<[1], [0], [0], [1], [0, 0, 1, 1], [], []>} : vector<8x128xbf16>, vector<128x128xbf16>, vector<8x128xf32> -> vector<8x128xf32>
    %31 = arith.addf %27, %30 : vector<8x128xf32>
    %c0_25 = arith.constant 0 : index
    %c0_26 = arith.constant 0 : index
    %32 = vector.load %arg11[%c0_25, %c0_26] : memref<1x128xf32, #tpu.memory_space<vmem>>, vector<1x128xf32>
    %33 = vector.broadcast %32 : vector<1x128xf32> to vector<8x128xf32>
    %34 = arith.addf %31, %33 : vector<8x128xf32>
    %cst_27 = arith.constant 0.000000e+00 : f32
    %35 = vector.broadcast %cst_27 : f32 to vector<8x128xf32>
    %36 = arith.maximumf %34, %35 : vector<8x128xf32>
    %37 = arith.truncf %36 : vector<8x128xf32> to vector<8x128xbf16>
    %c0_28 = arith.constant 0 : index
    %c0_29 = arith.constant 0 : index
    %38 = vector.load %arg12[%c0_28, %c0_29] : memref<128x128xbf16, #tpu.memory_space<vmem>>, vector<128x128xbf16>
    %cst_30 = arith.constant dense<0.000000e+00> : vector<8x128xf32>
    %39 = tpu.matmul %37, %38, %cst_30 {dimension_numbers = #tpu.dot_dimension_numbers<[1], [0], [0], [1], [0, 0, 1, 1], [], []>} : vector<8x128xbf16>, vector<128x128xbf16>, vector<8x128xf32> -> vector<8x128xf32>
    %c0_31 = arith.constant 0 : index
    %c0_32 = arith.constant 0 : index
    %40 = vector.load %arg13[%c0_31, %c0_32] : memref<1x128xf32, #tpu.memory_space<vmem>>, vector<1x128xf32>
    %41 = vector.broadcast %40 : vector<1x128xf32> to vector<8x128xf32>
    %42 = arith.addf %39, %41 : vector<8x128xf32>
    %cst_33 = arith.constant 0.000000e+00 : f32
    %43 = vector.broadcast %cst_33 : f32 to vector<8x128xf32>
    %44 = arith.maximumf %42, %43 : vector<8x128xf32>
    %c0_34 = arith.constant 0 : index
    %c0_35 = arith.constant 0 : index
    %45 = vector.load %arg14[%c0_34, %c0_35] : memref<8x128xf32, #tpu.memory_space<vmem>>, vector<8x128xf32>
    tpu.vector_store %arg14[%c0_34, %c0_35], %44 {strides = array<i32>} : memref<8x128xf32, #tpu.memory_space<vmem>>, vector<8x128xf32>,
    return
  }
  func.func @transform_0(%arg0: i32) -> (i32, i32) {
    %c0_i32 = arith.constant 0 : i32
    %c0_i32_0 = arith.constant 0 : i32
    return %arg0, %c0_i32 : i32, i32
  }
  func.func @transform_1(%arg0: i32) -> (i32, i32) {
    %c0_i32 = arith.constant 0 : i32
    %c0_i32_0 = arith.constant 0 : i32
    return %arg0, %c0_i32 : i32, i32
  }
  func.func @transform_2(%arg0: i32) -> (i32, i32) {
    %c0_i32 = arith.constant 0 : i32
    %c0_i32_0 = arith.constant 0 : i32
    %c0_i32_1 = arith.constant 0 : i32
    return %c0_i32, %c0_i32_0 : i32, i32
  }
  func.func @transform_3(%arg0: i32) -> (i32, i32) {
    %c0_i32 = arith.constant 0 : i32
    %c0_i32_0 = arith.constant 0 : i32
    %c0_i32_1 = arith.constant 0 : i32
    return %c0_i32, %c0_i32_0 : i32, i32
  }
  func.func @transform_4(%arg0: i32) -> (i32, i32) {
    %c0_i32 = arith.constant 0 : i32
    %c0_i32_0 = arith.constant 0 : i32
    %c0_i32_1 = arith.constant 0 : i32
    return %c0_i32, %c0_i32_0 : i32, i32
  }
  func.func @transform_5(%arg0: i32) -> (i32, i32) {
    %c0_i32 = arith.constant 0 : i32
    %c0_i32_0 = arith.constant 0 : i32
    %c0_i32_1 = arith.constant 0 : i32
    return %c0_i32, %c0_i32_0 : i32, i32
  }
  func.func @transform_6(%arg0: i32) -> (i32, i32) {
    %c0_i32 = arith.constant 0 : i32
    %c0_i32_0 = arith.constant 0 : i32
    %c0_i32_1 = arith.constant 0 : i32
    return %c0_i32, %c0_i32_0 : i32, i32
  }
  func.func @transform_7(%arg0: i32) -> (i32, i32) {
    %c0_i32 = arith.constant 0 : i32
    %c0_i32_0 = arith.constant 0 : i32
    %c0_i32_1 = arith.constant 0 : i32
    return %c0_i32, %c0_i32_0 : i32, i32
  }
  func.func @transform_8(%arg0: i32) -> (i32, i32) {
    %c0_i32 = arith.constant 0 : i32
    %c0_i32_0 = arith.constant 0 : i32
    %c0_i32_1 = arith.constant 0 : i32
    return %c0_i32, %c0_i32_0 : i32, i32
  }
  func.func @transform_9(%arg0: i32) -> (i32, i32) {
    %c0_i32 = arith.constant 0 : i32
    %c0_i32_0 = arith.constant 0 : i32
    %c0_i32_1 = arith.constant 0 : i32
    return %c0_i32, %c0_i32_0 : i32, i32
  }
  func.func @transform_10(%arg0: i32) -> (i32, i32) {
    %c0_i32 = arith.constant 0 : i32
    %c0_i32_0 = arith.constant 0 : i32
    %c0_i32_1 = arith.constant 0 : i32
    return %c0_i32, %c0_i32_0 : i32, i32
  }
  func.func @transform_11(%arg0: i32) -> (i32, i32) {
    %c0_i32 = arith.constant 0 : i32
    %c0_i32_0 = arith.constant 0 : i32
    %c0_i32_1 = arith.constant 0 : i32
    return %c0_i32, %c0_i32_0 : i32, i32
  }
  func.func @transform_12(%arg0: i32) -> (i32, i32) {
    %c0_i32 = arith.constant 0 : i32
    %c0_i32_0 = arith.constant 0 : i32
    %c0_i32_1 = arith.constant 0 : i32
    return %c0_i32, %c0_i32_0 : i32, i32
  }
  func.func @transform_13(%arg0: i32) -> (i32, i32) {
    %c0_i32 = arith.constant 0 : i32
    %c0_i32_0 = arith.constant 0 : i32
    return %arg0, %c0_i32 : i32, i32
  }
}

</mosaic_0001>

<bundles_post_ra>
// kernel: tpu_custom_call.1
= control target key start
LH: loop header
LB: loop body
LE: loop exit
PB: predicated region body
PF: predicated region fallthrough
CT: control target
= control target key end

     0   :  { %18 = vsyncpa [#allocation3], 0  ;;  %s1628_s0 = inlined_call_operand.hbm [shape: f32[8,128], index: 0, kind: input, shape index: {}]   ;;  %s1629_s1 = inlined_call_operand.hbm [shape: f32[8,128], index: 1, kind: input, shape index: {}]   ;;  %s1630_s2 = inlined_call_operand.hbm [shape: bf16[128,128], index: 2, kind: input, shape index: {}]   ;;  %s1631_s3 = inlined_call_operand.vmem [shape: f32[1,128], index: 3, kind: input, shape index: {}]   ;;  %s1632_s4 = inlined_call_operand.hbm [shape: bf16[128,128], index: 4, kind: input, shape index: {}]   ;;  %s1633_s5 = inlined_call_operand.vmem [shape: f32[1,128], index: 5, kind: input, shape index: {}]   ;;  %s1634_s6 = inlined_call_operand.hbm [shape: bf16[128,128], index: 6, kind: input, shape index: {}]   ;;  %s1635_s7 = inlined_call_operand.vmem [shape: f32[1,128], index: 7, kind: input, shape index: {}]   ;;  %s1636_s8 = inlined_call_operand.hbm [shape: bf16[128,128], index: 8, kind: input, shape index: {}]   ;;  %s1637_s9 = inlined_call_operand.hbm [shape: bf16[128,128], index: 9, kind: input, shape index: {}]   ;;  %s1638_s10 = inlined_call_operand.vmem [shape: f32[1,128], index: 10, kind: input, shape index: {}]   ;;  %s1639_s11 = inlined_call_operand.hbm [shape: bf16[128,128], index: 11, kind: input, shape index: {}]   ;;  %s1640_s12 = inlined_call_operand.vmem [shape: f32[1,128], index: 12, kind: input, shape index: {}]   ;;  %s1641_s13 = inlined_call_operand.hbm [shape: f32[8,128], index: 13, kind: output, shape index: {}]  }
   0x1   :  { %19 = vsyncpa [#allocation6], 0 }
   0x2   :  { %20 = vsyncpa [#allocation9], 0 }
   0x3   :  { %21 = vsyncpa [#allocation12], 0 }
   0x4   :  { %22 = vsyncpa [#allocation15], 0 }
   0x5   :  { %23 = vsyncpa [#allocation4], 0  ;;  %s1344_s25 = smov [#allocation5]   ;;  %s1134_s29 = scalar_lea.hbm %s1629_s1, 128 }
   0x6   :  { %s40_s26 = sshll.u32 %s1344_s25, 4  ;;  %p1135_p0 = scmp.ne.s32.totalorder %s1629_s1, %s1134_s29  ;;  %s41_s26 = int_to_ptr.vmem [resolvable:$true] %s40_s26 }
   0x7   :  { %p1138_p1 = scmp.lt.u32.totalorder %s1134_s29, %s1629_s1 }
   0x9   :  { %p1140_p2 = pnand %p1138_p1, %p1135_p0 }
   0xb   :  { %1143 = shalt.err (!%p1140_p2)
}
   0xc   :  { %s1144_s17 = scalar_lea.vmem %s41_s26, 128  ;;  %p1149_p4 = scmp.lt.s32.totalorder %s41_s26, %s41_s26 }
   0xd   :  { %p1145_p3 = scmp.ne.s32.totalorder %s41_s26, %s1144_s17  ;;  %p1150_p5 = scmp.lt.s32.totalorder %s1144_s17, %s1144_s17 }
   0xf   :  { %p1151_p6 = por %p1150_p5, %p1149_p4 }
  0x11   :  { %p1152_p7 = pnand %p1151_p6, %p1145_p3 }
  0x13   :  { %1155 = shalt.err (!%p1152_p7)
}
  0x14   :  { %43 = dma.hbm_to_vmem [thread:$0]  %s1629_s1, 128, %s41_s26, [#allocation6]  }
  0x15   :  { %s1345_s20 = smov [#allocation8]   ;;  %s1346_s22 = smov [#allocation11]  }
  0x16   :  { %s63_s21 = sshll.u32 %s1345_s20, 4  ;;  %s91_s23 = sshll.u32 %s1346_s22, 4  ;;  %s64_s21 = int_to_ptr.vmem [resolvable:$true] %s63_s21  ;;  %s92_s23 = int_to_ptr.vmem [resolvable:$true] %s91_s23 }
  0x17   :  { %s1156_s27 = scalar_lea.hbm %s1632_s4, 1024 }
  0x18   :  { %p1157_p8 = scmp.ne.s32.totalorder %s1632_s4, %s1156_s27  ;;  %p1160_p9 = scmp.lt.u32.totalorder %s1156_s27, %s1632_s4 }
  0x1a   :  { %p1162_p10 = pnand %p1160_p9, %p1157_p8 }
  0x1c   :  { %1165 = shalt.err (!%p1162_p10)
}
  0x1d   :  { %s1166_s1 = scalar_lea.vmem %s64_s21, 1024  ;;  %p1171_p12 = scmp.lt.s32.totalorder %s64_s21, %s64_s21 }
  0x1e   :  { %p1167_p11 = scmp.ne.s32.totalorder %s64_s21, %s1166_s1  ;;  %p1172_p13 = scmp.lt.s32.totalorder %s1166_s1, %s1166_s1 }
  0x20   :  { %p1173_p0 = por %p1172_p13, %p1171_p12 }
  0x22   :  { %p1174_p1 = pnand %p1173_p0, %p1167_p11 }
  0x24   :  { %1177 = shalt.err (!%p1174_p1)
}
  0x25   :  { %s1347_s26 = smov 64   ;;  %s1348_s15 = smov 4  }
  0x26   :  { %69 = dma.hbm_to_vmem [thread:$0]  %s1632_s4, 1024, %s64_s21, [#allocation9], %s1347_s26, %s1347_s26, %s1348_s15  }
  0x27   :  { %s1178_s20 = scalar_lea.hbm %s1636_s8, 1024 }
  0x28   :  { %p1179_p2 = scmp.ne.s32.totalorder %s1636_s8, %s1178_s20  ;;  %p1182_p3 = scmp.lt.u32.totalorder %s1178_s20, %s1636_s8 }
  0x2a   :  { %p1184_p4 = pnand %p1182_p3, %p1179_p2 }
  0x2c   :  { %1187 = shalt.err (!%p1184_p4)
}
  0x2d   :  { %s1188_s28 = scalar_lea.vmem %s92_s23, 1024  ;;  %p1193_p6 = scmp.lt.s32.totalorder %s92_s23, %s92_s23 }
  0x2e   :  { %p1189_p5 = scmp.ne.s32.totalorder %s92_s23, %s1188_s28  ;;  %p1194_p7 = scmp.lt.s32.totalorder %s1188_s28, %s1188_s28 }
  0x30   :  { %p1195_p8 = por %p1194_p7, %p1193_p6 }
  0x32   :  { %p1196_p9 = pnand %p1195_p8, %p1189_p5 }
  0x34   :  { %1199 = shalt.err (!%p1196_p9)
}
  0x35   :  { %97 = dma.hbm_to_vmem [thread:$0]  %s1636_s8, 1024, %s92_s23, [#allocation12], %s1347_s26, %s1347_s26, %s1348_s15  }
  0x36   :  { %s1349_s29 = smov [#allocation2]   ;;  %s1350_s14 = smov [#allocation7]  }
  0x37   :  { %s30_s30 = sshll.u32 %s1349_s29, 4  ;;  %s49_s1 = sshll.u32 %s1350_s14, 4  ;;  %s31_s30 = int_to_ptr.vmem [resolvable:$true] %s30_s30  ;;  %s50_s1 = int_to_ptr.vmem [resolvable:$true] %s49_s1 }
  0x38   :  { %s1200_s18 = scalar_lea.hbm %s1628_s0, 128 }
  0x39   :  { %p1201_p10 = scmp.ne.s32.totalorder %s1628_s0, %s1200_s18  ;;  %p1204_p11 = scmp.lt.u32.totalorder %s1200_s18, %s1628_s0 }
  0x3b   :  { %p1206_p12 = pnand %p1204_p11, %p1201_p10 }
  0x3d   :  { %1209 = shalt.err (!%p1206_p12)
}
  0x3e   :  { %s1210_s8 = scalar_lea.vmem %s31_s30, 128  ;;  %p1215_p0 = scmp.lt.s32.totalorder %s31_s30, %s31_s30 }
  0x3f   :  { %p1211_p13 = scmp.ne.s32.totalorder %s31_s30, %s1210_s8  ;;  %p1216_p1 = scmp.lt.s32.totalorder %s1210_s8, %s1210_s8 }
  0x41   :  { %p1217_p2 = por %p1216_p1, %p1215_p0 }
  0x43   :  { %p1218_p3 = pnand %p1217_p2, %p1211_p13 }
  0x45   :  { %1221 = shalt.err (!%p1218_p3)
}
  0x46   :  { %33 = dma.hbm_to_vmem [thread:$0]  %s1628_s0, 128, %s31_s30, [#allocation3]  }
  0x47   :  { %s1222_s4 = scalar_lea.hbm %s1630_s2, 1024 }
  0x48   :  { %p1223_p4 = scmp.ne.s32.totalorder %s1630_s2, %s1222_s4  ;;  %p1226_p5 = scmp.lt.u32.totalorder %s1222_s4, %s1630_s2 }
  0x4a   :  { %p1228_p6 = pnand %p1226_p5, %p1223_p4 }
  0x4c   :  { %1231 = shalt.err (!%p1228_p6)
}
  0x4d   :  { %s1232_s17 = scalar_lea.vmem %s50_s1, 1024  ;;  %p1237_p8 = scmp.lt.s32.totalorder %s50_s1, %s50_s1 }
  0x4e   :  { %p1233_p7 = scmp.ne.s32.totalorder %s50_s1, %s1232_s17  ;;  %p1238_p9 = scmp.lt.s32.totalorder %s1232_s17, %s1232_s17 }
  0x50   :  { %p1239_p10 = por %p1238_p9, %p1237_p8 }
  0x52   :  { %p1240_p11 = pnand %p1239_p10, %p1233_p7 }
  0x54   :  { %1243 = shalt.err (!%p1240_p11)
}
  0x55   :  { %55 = dma.hbm_to_vmem [thread:$0]  %s1630_s2, 1024, %s50_s1, [#allocation6], %s1347_s26, %s1347_s26, %s1348_s15  }
  0x56   :  { %s1351_s18 = smov [#allocation10]   ;;  %s1352_s20 = smov [#allocation13]  }
  0x57   :  { %s77_s19 = sshll.u32 %s1351_s18, 4  ;;  %s103_s22 = sshll.u32 %s1352_s20, 4  ;;  %s78_s19 = int_to_ptr.vmem [resolvable:$true] %s77_s19  ;;  %s104_s22 = int_to_ptr.vmem [resolvable:$true] %s103_s22 }
  0x58   :  { %s1244_s23 = scalar_lea.hbm %s1634_s6, 1024 }
  0x59   :  { %p1245_p12 = scmp.ne.s32.totalorder %s1634_s6, %s1244_s23  ;;  %p1248_p13 = scmp.lt.u32.totalorder %s1244_s23, %s1634_s6 }
  0x5b   :  { %p1250_p0 = pnand %p1248_p13, %p1245_p12 }
  0x5d   :  { %1253 = shalt.err (!%p1250_p0)
}
  0x5e   :  { %s1254_s2 = scalar_lea.vmem %s78_s19, 1024  ;;  %p1259_p2 = scmp.lt.s32.totalorder %s78_s19, %s78_s19 }
  0x5f   :  { %p1255_p1 = scmp.ne.s32.totalorder %s78_s19, %s1254_s2  ;;  %p1260_p3 = scmp.lt.s32.totalorder %s1254_s2, %s1254_s2 }
  0x61   :  { %p1261_p4 = por %p1260_p3, %p1259_p2 }
  0x63   :  { %p1262_p5 = pnand %p1261_p4, %p1255_p1 }
  0x65   :  { %1265 = shalt.err (!%p1262_p5)
}
  0x66   :  { %83 = dma.hbm_to_vmem [thread:$0]  %s1634_s6, 1024, %s78_s19, [#allocation9], %s1347_s26, %s1347_s26, %s1348_s15  }
  0x67   :  { %s1266_s16 = scalar_lea.hbm %s1637_s9, 1024 }
  0x68   :  { %p1267_p6 = scmp.ne.s32.totalorder %s1637_s9, %s1266_s16  ;;  %p1270_p7 = scmp.lt.u32.totalorder %s1266_s16, %s1637_s9 }
  0x6a   :  { %p1272_p8 = pnand %p1270_p7, %p1267_p6 }
  0x6c   :  { %1275 = shalt.err (!%p1272_p8)
}
  0x6d   :  { %s1276_s20 = scalar_lea.vmem %s104_s22, 1024  ;;  %p1281_p10 = scmp.lt.s32.totalorder %s104_s22, %s104_s22 }
  0x6e   :  { %p1277_p9 = scmp.ne.s32.totalorder %s104_s22, %s1276_s20  ;;  %p1282_p11 = scmp.lt.s32.totalorder %s1276_s20, %s1276_s20 }
  0x70   :  { %p1283_p12 = por %p1282_p11, %p1281_p10 }
  0x72   :  { %p1284_p13 = pnand %p1283_p12, %p1277_p9 }
  0x74   :  { %1287 = shalt.err (!%p1284_p13)
}
  0x75   :  { %109 = dma.hbm_to_vmem [thread:$0]  %s1637_s9, 1024, %s104_s22, [#allocation12], %s1347_s26, %s1347_s26, %s1348_s15  }
  0x76   :  { %s1353_s24 = smov [#allocation14]   ;;  %s1288_s27 = scalar_lea.hbm %s1639_s11, 1024 }
  0x77   :  { %s117_s8 = sshll.u32 %s1353_s24, 4  ;;  %p1289_p0 = scmp.ne.s32.totalorder %s1639_s11, %s1288_s27  ;;  %s118_s8 = int_to_ptr.vmem [resolvable:$true] %s117_s8 }
  0x78   :  { %p1292_p1 = scmp.lt.u32.totalorder %s1288_s27, %s1639_s11 }
  0x7a   :  { %p1294_p2 = pnand %p1292_p1, %p1289_p0 }
  0x7c   :  { %1297 = shalt.err (!%p1294_p2)
}
  0x7d   :  { %s1298_s21 = scalar_lea.vmem %s118_s8, 1024  ;;  %p1303_p4 = scmp.lt.s32.totalorder %s118_s8, %s118_s8 }
  0x7e   :  { %p1299_p3 = scmp.ne.s32.totalorder %s118_s8, %s1298_s21  ;;  %p1304_p5 = scmp.lt.s32.totalorder %s1298_s21, %s1298_s21 }
  0x80   :  { %p1305_p6 = por %p1304_p5, %p1303_p4 }
  0x82   :  { %p1306_p7 = pnand %p1305_p6, %p1299_p3 }
  0x84   :  { %1309 = shalt.err (!%p1306_p7)
}
  0x85   :  { %123 = dma.hbm_to_vmem [thread:$0]  %s1639_s11, 1024, %s118_s8, [#allocation15], %s1347_s26, %s1347_s26, %s1348_s15  }
  0x86   :  { %1332 = dma.done.wait [#allocation3], 128  }
  0x87   :  { %1333 = vsyncadd [#allocation3], 4294967168 }
  0x88   :  { %1334 = dma.done.wait [#allocation6], 1152  }
  0x89   :  { %1335 = vsyncadd [#allocation6], 4294966144 }
  0x8a   :  { %1336 = dma.done.wait [#allocation9], 2048  }
  0x8b   :  { %1337 = vsyncadd [#allocation9], 4294965248 }
  0x8c   :  { %1338 = dma.done.wait [#allocation12], 2048  }
  0x8d   :  { %1339 = vsyncadd [#allocation12], 4294965248 }
  0x8e   :  { %1340 = dma.done.wait [#allocation15], 1024  }
  0x8f   :  { %1341 = vsyncadd [#allocation15], 4294966272  ;;  %v1354_v0 = vmov 0.0   ;;  %vm1355_vm0 = vmmov 0   ;;  %v1084_v1 = vld [vmem:[#allocation7] sm:$0xff]   ;;  %v1085_v2 = vld [vmem:[#allocation7 + $0x8] sm:$0xff]  }
  0x90   :  { %951 = vmatprep.subr.bf16.mxu0 %v1354_v0  ;;  %967 = vmatprep.mubr.msk.bf16.mxu0 %vm1355_vm0, %v1354_v0  ;;  %v1086_v3 = vld [vmem:[#allocation7 + $0x10] sm:$0xff]   ;;  %v1092_v4 = vld [vmem:[#allocation8] sm:$0xff]   ;;  %v1087_v5 = vld [vmem:[#allocation7 + $0x18] sm:$0xff]   ;;  %s1356_s0 = smov [#allocation16]  }
  0x91   :  { %971 = vmatprep.subr.bf16.mxu1 %v1354_v0  ;;  %987 = vmatprep.mubr.msk.bf16.mxu1 %vm1355_vm0, %v1354_v0  ;;  %v1093_v6 = vld [vmem:[#allocation8 + $0x8] sm:$0xff]   ;;  %v1088_v7 = vld [vmem:[#allocation7 + $0x20] sm:$0xff]   ;;  %v1094_v8 = vld [vmem:[#allocation8 + $0x10] sm:$0xff]   ;;  %s831_s30 = sshll.u32 %s1356_s0, 4  ;;  %s832_s30 = int_to_ptr.vmem [resolvable:$true] %s831_s30 }
  0x92   :  { %952 = vmatpush3.bf16.msra.mxu0 %v1084_v1  ;;  %972 = vmatpush3.bf16.msra.mxu1 %v1092_v4  ;;  %v1089_v9 = vld [vmem:[#allocation7 + $0x28] sm:$0xff]   ;;  %v1095_v10 = vld [vmem:[#allocation8 + $0x18] sm:$0xff]   ;;  %v1090_v11 = vld [vmem:[#allocation7 + $0x30] sm:$0xff]   ;;  %p1315_p9 = scmp.lt.s32.totalorder %s832_s30, %s832_s30 }
  0x93   :  { %953 = vmatprep.subr.bf16.mxu0 %v1354_v0  ;;  %973 = vmatprep.subr.bf16.mxu1 %v1354_v0  ;;  %v1096_v12 = vld [vmem:[#allocation8 + $0x20] sm:$0xff]   ;;  %v1091_v13 = vld [vmem:[#allocation7 + $0x38] sm:$0xff]   ;;  %v1097_v15 = vld [vmem:[#allocation8 + $0x28] sm:$0xff]  }
  0x94   :  { %v151_v14 = vld [vmem:[#allocation5] sm:$0xff]  ;;  %v1098_v17 = vld [vmem:[#allocation8 + $0x30] sm:$0xff]   ;;  %v1100_v19 = vld [vmem:[#allocation10] sm:$0xff]  }
  0x95   :  { %v152_v16 = vpack.c.bf16 %v151_v14, %v151_v14  ;;  %v1099_v18 = vld [vmem:[#allocation8 + $0x38] sm:$0xff]   ;;  %v1101_v20 = vld [vmem:[#allocation10 + $0x8] sm:$0xff]   ;;  %v1102_v21 = vld [vmem:[#allocation10 + $0x10] sm:$0xff]  }
  0x96   :  { %954 = vmatpush3.bf16.msra.mxu0 %v1085_v2  ;;  %974 = vmatpush3.bf16.msra.mxu1 %v1093_v6  ;;  %v1103_v22 = vld [vmem:[#allocation10 + $0x18] sm:$0xff]   ;;  %v1104_v23 = vld [vmem:[#allocation10 + $0x20] sm:$0xff]   ;;  %v1105_v24 = vld [vmem:[#allocation10 + $0x28] sm:$0xff]  }
  0x97   :  { %955 = vmatprep.subr.bf16.mxu0 %v1354_v0  ;;  %975 = vmatprep.subr.bf16.mxu1 %v1354_v0  ;;  %v844_v25 = vld [vmem:[%s1631_s3] ss:$0 sm:$0xff]  ;;  %v1107_v34 = vld [vmem:[#allocation10 + $0x38] sm:$0xff]   ;;  %v1109_v35 = vld [vmem:[#allocation13] sm:$0xff]  }
  0x98   :  { %v1106_v33 = vld [vmem:[#allocation10 + $0x30] sm:$0xff]   ;;  %v1111_v36 = vld [vmem:[#allocation13 + $0x8] sm:$0xff]   ;;  %v1115_v38 = vld [vmem:[#allocation13 + $0x18] sm:$0xff]  }
  0x99   :  { %v1113_v37 = vld [vmem:[#allocation13 + $0x10] sm:$0xff]   ;;  %v1108_v46 = vld [vmem:[#allocation11] sm:$0xff]   ;;  %v1110_v48 = vld [vmem:[#allocation11 + $0x8] sm:$0xff]  }
  0x9a   :  { %956 = vmatpush3.bf16.msra.mxu0 %v1086_v3  ;;  %976 = vmatpush3.bf16.msra.mxu1 %v1094_v8  ;;  %v853_v39 = vld [vmem:[%s1633_s5] ss:$0 sm:$0xff]  ;;  %v1114_v50 = vld [vmem:[#allocation11 + $0x18] sm:$0xff]   ;;  %v1116_v51 = vld [vmem:[#allocation11 + $0x20] sm:$0xff]  }
  0x9b   :  { %957 = vmatprep.subr.bf16.mxu0 %v1354_v0  ;;  %977 = vmatprep.subr.bf16.mxu1 %v1354_v0  ;;  %v1112_v49 = vld [vmem:[#allocation11 + $0x10] sm:$0xff]   ;;  %v1117_v52 = vld [vmem:[#allocation13 + $0x20] sm:$0xff]   ;;  %v1118_v53 = vld [vmem:[#allocation11 + $0x28] sm:$0xff]  }
  0x9c   :  { %v1119_v54 = vld [vmem:[#allocation13 + $0x28] sm:$0xff]   ;;  %v1120_v55 = vld [vmem:[#allocation11 + $0x30] sm:$0xff]   ;;  %v1122_v57 = vld [vmem:[#allocation11 + $0x38] sm:$0xff]  }
  0x9d   :  { %v1121_v56 = vld [vmem:[#allocation13 + $0x30] sm:$0xff]   ;;  %v1123_v59 = vld [vmem:[#allocation13 + $0x38] sm:$0xff]  }
  0x9e   :  { %958 = vmatpush3.bf16.msra.mxu0 %v1087_v5  ;;  %978 = vmatpush3.bf16.msra.mxu1 %v1095_v10  ;;  %v491_v58 = vld [vmem:[#allocation2] sm:$0xff]  ;;  %v1124_v5 = vld [vmem:[#allocation14] sm:$0xff]  }
  0x9f   :  { %959 = vmatprep.subr.bf16.mxu0 %v1354_v0  ;;  %979 = vmatprep.subr.bf16.mxu1 %v1354_v0  ;;  %v492_v60 = vpack.c.bf16 %v491_v58, %v491_v58  ;;  %v862_v61 = vld [vmem:[%s1635_s7] ss:$0 sm:$0xff]  ;;  %v1128_v10 = vld [vmem:[#allocation14 + $0x20] sm:$0xff]  }
  0xa0   :  { %v1126_v8 = vld [vmem:[#allocation14 + $0x10] sm:$0xff]  }
  0xa2   :  { %960 = vmatpush3.bf16.msra.mxu0 %v1088_v7  ;;  %980 = vmatpush3.bf16.msra.mxu1 %v1096_v12  ;;  %v1125_v7 = vld [vmem:[#allocation14 + $0x8] sm:$0xff]  }
  0xa3   :  { %961 = vmatprep.subr.bf16.mxu0 %v1354_v0  ;;  %981 = vmatprep.subr.bf16.mxu1 %v1354_v0 }
  0xa6   :  { %962 = vmatpush3.bf16.msra.mxu0 %v1089_v9  ;;  %982 = vmatpush3.bf16.msra.mxu1 %v1097_v15  ;;  %v1127_v9 = vld [vmem:[#allocation14 + $0x18] sm:$0xff]  }
  0xa7   :  { %963 = vmatprep.subr.bf16.mxu0 %v1354_v0  ;;  %983 = vmatprep.subr.bf16.mxu1 %v1354_v0 }
  0xaa   :  { %964 = vmatpush3.bf16.msra.mxu0 %v1090_v11  ;;  %984 = vmatpush3.bf16.msra.mxu1 %v1098_v17  ;;  %v1129_v11 = vld [vmem:[#allocation14 + $0x28] sm:$0xff]   ;;  %v1131_v17 = vld [vmem:[#allocation14 + $0x38] sm:$0xff]  }
  0xab   :  { %965 = vmatprep.subr.bf16.mxu0 %v1354_v0  ;;  %985 = vmatprep.subr.bf16.mxu1 %v1354_v0 }
  0xae   :  { %966 = vmatpush3.bf16.msra.mxu0 %v1091_v13  ;;  %986 = vmatpush3.bf16.msra.mxu1 %v1099_v18 }
  0xaf   :  { %991 = vmatprep.subr.bf16.mxu0 %v1354_v0  ;;  %1011 = vmatprep.subr.bf16.mxu1 %v1354_v0 }
  0xb1   :  { %968 = vmatmul.mubr.bf16.vlgmr.msra.gmra.mrb[0].mxu0 %v152_v16  ;;  %v1130_v16 = vld [vmem:[#allocation14 + $0x30] sm:$0xff]  }
  0xb2   :  { %1007 = vmatprep.mubr.msk.bf16.mxu0 %vm1355_vm0, %v1354_v0  ;;  %992 = vmatpush3.bf16.msra.mxu0 %v1100_v19  ;;  %v887_v19 = vld [vmem:[%s1638_s10] ss:$0 sm:$0xff]  ;;  %s1310_s10 = scalar_lea.vmem %s832_s30, 128 }
  0xb3   :  { %993 = vmatprep.subr.bf16.mxu0 %v1354_v0  ;;  %p1311_p8 = scmp.ne.s32.totalorder %s832_s30, %s1310_s10  ;;  %p1316_p10 = scmp.lt.s32.totalorder %s1310_s10, %s1310_s10 }
  0xb5   :  { %p1317_p11 = por %p1316_p10, %p1315_p9 }
  0xb6   :  { %994 = vmatpush3.bf16.msra.mxu0 %v1101_v20 }
  0xb7   :  { %995 = vmatprep.subr.bf16.mxu0 %v1354_v0  ;;  %p1318_p12 = pnand %p1317_p11, %p1311_p8 }
  0xba   :  { %996 = vmatpush3.bf16.msra.mxu0 %v1102_v21 }
  0xbb   :  { %997 = vmatprep.subr.bf16.mxu0 %v1354_v0 }
  0xbe   :  { %998 = vmatpush3.bf16.msra.mxu0 %v1103_v22 }
  0xbf   :  { %999 = vmatprep.subr.bf16.mxu0 %v1354_v0 }
  0xc2   :  { %1000 = vmatpush3.bf16.msra.mxu0 %v1104_v23 }
  0xc3   :  { %1001 = vmatprep.subr.bf16.mxu0 %v1354_v0 }
  0xc6   :  { %1002 = vmatpush3.bf16.msra.mxu0 %v1105_v24 }
  0xc7   :  { %1003 = vmatprep.subr.bf16.mxu0 %v1354_v0 }
  0xca   :  { %1004 = vmatpush3.bf16.msra.mxu0 %v1106_v33 }
  0xcb   :  { %1005 = vmatprep.subr.bf16.mxu0 %v1354_v0 }
  0xce   :  { %1006 = vmatpush3.bf16.msra.mxu0 %v1107_v34 }
  0xcf   :  { %1031 = vmatprep.subr.bf16.mxu0 %v1354_v0 }
 0x184   :  { %v258_v26 = vpop.f32.mrb[0].mxu0 }
 0x185   :  { %v259_v27 = vadd.f32 %v844_v25, %v258_v26  ;;  %v969_v28 = vpop.f32.mrb[1].mxu0 }
 0x186   :  { %v261_v29 = vpop.f32.mrb[2].mxu0 }
 0x187   :  { %v264_v30 = vmax.f32 %v259_v27, 0.0  ;;  %v970_v31 = vpop.f32.mrb[3].mxu0  ;;  %v888_v27 = vld [vmem:[%s1640_s12] ss:$0 sm:$0xff] }
 0x189   :  { %v265_v32 = vpack.c.bf16 %v264_v30, %v264_v30 }
 0x18b   :  { %988 = vmatmul.mubr.bf16.vlgmr.msra.gmra.mrb[0].mxu1 %v265_v32 }
 0x18c   :  { %1027 = vmatprep.mubr.msk.bf16.mxu1 %vm1355_vm0, %v1354_v0  ;;  %1012 = vmatpush3.bf16.msra.mxu1 %v1109_v35 }
 0x18d   :  { %1013 = vmatprep.subr.bf16.mxu1 %v1354_v0 }
 0x190   :  { %1014 = vmatpush3.bf16.msra.mxu1 %v1111_v36 }
 0x191   :  { %1015 = vmatprep.subr.bf16.mxu1 %v1354_v0 }
 0x194   :  { %1016 = vmatpush3.bf16.msra.mxu1 %v1113_v37 }
 0x195   :  { %1017 = vmatprep.subr.bf16.mxu1 %v1354_v0 }
 0x198   :  { %1018 = vmatpush3.bf16.msra.mxu1 %v1115_v38 }
 0x199   :  { %1019 = vmatprep.subr.bf16.mxu1 %v1354_v0 }
 0x19c   :  { %1020 = vmatpush3.bf16.msra.mxu1 %v1117_v52 }
 0x19d   :  { %1021 = vmatprep.subr.bf16.mxu1 %v1354_v0 }
 0x1a0   :  { %1022 = vmatpush3.bf16.msra.mxu1 %v1119_v54 }
 0x1a1   :  { %1023 = vmatprep.subr.bf16.mxu1 %v1354_v0 }
 0x1a4   :  { %1024 = vmatpush3.bf16.msra.mxu1 %v1121_v56 }
 0x1a5   :  { %1025 = vmatprep.subr.bf16.mxu1 %v1354_v0 }
 0x1a8   :  { %1026 = vmatpush3.bf16.msra.mxu1 %v1123_v59 }
 0x1a9   :  { %1051 = vmatprep.subr.bf16.mxu1 %v1354_v0 }
 0x25e   :  { %v371_v40 = vpop.f32.mrb[0].mxu1 }
 0x25f   :  { %v372_v41 = vadd.f32 %v853_v39, %v371_v40  ;;  %v989_v42 = vpop.f32.mrb[1].mxu1 }
 0x260   :  { %v374_v43 = vpop.f32.mrb[2].mxu1 }
 0x261   :  { %v377_v44 = vmax.f32 %v372_v41, 0.0  ;;  %v990_v45 = vpop.f32.mrb[3].mxu1 }
 0x263   :  { %v378_v47 = vpack.c.bf16 %v377_v44, %v377_v44 }
 0x265   :  { %1008 = vmatmul.mubr.bf16.vlgmr.msra.gmra.mrb[4].mxu0 %v378_v47 }
 0x266   :  { %1032 = vmatpush3.bf16.msra.mxu0 %v1108_v46  ;;  %1047 = vmatprep.mubr.msk.bf16.mxu0 %vm1355_vm0, %v1354_v0 }
 0x267   :  { %1033 = vmatprep.subr.bf16.mxu0 %v1354_v0 }
 0x26a   :  { %1034 = vmatpush3.bf16.msra.mxu0 %v1110_v48 }
 0x26b   :  { %1035 = vmatprep.subr.bf16.mxu0 %v1354_v0 }
 0x26e   :  { %1036 = vmatpush3.bf16.msra.mxu0 %v1112_v49 }
 0x26f   :  { %1037 = vmatprep.subr.bf16.mxu0 %v1354_v0 }
 0x272   :  { %1038 = vmatpush3.bf16.msra.mxu0 %v1114_v50 }
 0x273   :  { %1039 = vmatprep.subr.bf16.mxu0 %v1354_v0 }
 0x276   :  { %1040 = vmatpush3.bf16.msra.mxu0 %v1116_v51 }
 0x277   :  { %1041 = vmatprep.subr.bf16.mxu0 %v1354_v0 }
 0x27a   :  { %1042 = vmatpush3.bf16.msra.mxu0 %v1118_v53 }
 0x27b   :  { %1043 = vmatprep.subr.bf16.mxu0 %v1354_v0 }
 0x27e   :  { %1044 = vmatpush3.bf16.msra.mxu0 %v1120_v55 }
 0x27f   :  { %1045 = vmatprep.subr.bf16.mxu0 %v1354_v0 }
 0x282   :  { %1046 = vmatpush3.bf16.msra.mxu0 %v1122_v57 }
 0x285   :  { %1048 = vmatmul.mubr.bf16.vlgmr.msra.gmra.mrb[8].mxu0 %v492_v60 }
 0x338   :  { %v484_v62 = vpop.f32.mrb[4].mxu0 }
 0x339   :  { %v485_v63 = vadd.f32 %v862_v61, %v484_v62  ;;  %v1009_v1 = vpop.f32.mrb[5].mxu0 }
 0x33a   :  { %v487_v2 = vpop.f32.mrb[6].mxu0 }
 0x33b   :  { %1132 = vtanh.f32 %v485_v63  ;;  %v1010_v3 = vpop.f32.mrb[7].mxu0 }
 0x345   :  { %v1133_v4 = vpop.eup %1132 }
 0x346   :  { %v509_v6 = vpack.c.bf16 %v1133_v4, %v1133_v4 }
 0x348   :  { %1028 = vmatmul.mubr.bf16.vlgmr.msra.gmra.mrb[4].mxu1 %v509_v6 }
 0x349   :  { %1052 = vmatpush3.bf16.msra.mxu1 %v1124_v5  ;;  %1067 = vmatprep.mubr.msk.bf16.mxu1 %vm1355_vm0, %v1354_v0 }
 0x34a   :  { %1053 = vmatprep.subr.bf16.mxu1 %v1354_v0 }
 0x34d   :  { %1054 = vmatpush3.bf16.msra.mxu1 %v1125_v7 }
 0x34e   :  { %1055 = vmatprep.subr.bf16.mxu1 %v1354_v0 }
 0x351   :  { %1056 = vmatpush3.bf16.msra.mxu1 %v1126_v8 }
 0x352   :  { %1057 = vmatprep.subr.bf16.mxu1 %v1354_v0 }
 0x355   :  { %1058 = vmatpush3.bf16.msra.mxu1 %v1127_v9 }
 0x356   :  { %1059 = vmatprep.subr.bf16.mxu1 %v1354_v0 }
 0x358   :  { %v696_v12 = vpop.f32.mrb[8].mxu0 }
 0x359   :  { %1060 = vmatpush3.bf16.msra.mxu1 %v1128_v10  ;;  %v1049_v13 = vpop.f32.mrb[9].mxu0 }
 0x35a   :  { %1061 = vmatprep.subr.bf16.mxu1 %v1354_v0  ;;  %v699_v14 = vpop.f32.mrb[10].mxu0 }
 0x35b   :  { %v1050_v15 = vpop.f32.mrb[11].mxu0 }
 0x35d   :  { %1062 = vmatpush3.bf16.msra.mxu1 %v1129_v11 }
 0x35e   :  { %1063 = vmatprep.subr.bf16.mxu1 %v1354_v0 }
 0x361   :  { %1064 = vmatpush3.bf16.msra.mxu1 %v1130_v16 }
 0x362   :  { %1065 = vmatprep.subr.bf16.mxu1 %v1354_v0 }
 0x365   :  { %1066 = vmatpush3.bf16.msra.mxu1 %v1131_v17 }
 0x41b   :  { %v608_v18 = vpop.f32.mrb[4].mxu1 }
 0x41c   :  { %v697_v20 = vadd.f32 %v696_v12, %v608_v18  ;;  %v1029_v21 = vpop.f32.mrb[5].mxu1 }
 0x41d   :  { %v611_v22 = vpop.f32.mrb[6].mxu1 }
 0x41e   :  { %v709_v23 = vadd.f32 %v887_v19, %v697_v20  ;;  %v1030_v24 = vpop.f32.mrb[7].mxu1 }
 0x420   :  { %v710_v25 = vmax.f32 %v709_v23, 0.0 }
 0x422   :  { %v711_v26 = vpack.c.bf16 %v710_v25, %v710_v25 }
 0x424   :  { %1068 = vmatmul.mubr.bf16.vlgmr.msra.gmra.mrb[8].mxu1 %v711_v26 }
 0x4f7   :  { %v817_v0 = vpop.f32.mrb[8].mxu1 }
 0x4f8   :  { %v818_v28 = vadd.f32 %v888_v27, %v817_v0  ;;  %v1069_v29 = vpop.f32.mrb[9].mxu1 }
 0x4f9   :  { %v820_v30 = vpop.f32.mrb[10].mxu1 }
 0x4fa   :  { %v823_v31 = vmax.f32 %v818_v28, 0.0  ;;  %v1070_v32 = vpop.f32.mrb[11].mxu1 }
 0x4fc   :  { %824 = vst [vmem:[#allocation16] sm:$0xff] %v823_v31 }
 0x4fd   :  { %1321 = shalt.err (!%p1318_p12)
}
 0x4fe   :  { %s1322_s12 = scalar_lea.hbm %s1641_s13, 128 }
 0x4ff   :  { %p1323_p13 = scmp.ne.s32.totalorder %s1641_s13, %s1322_s12  ;;  %p1326_p0 = scmp.lt.u32.totalorder %s1322_s12, %s1641_s13 }
 0x501   :  { %p1328_p1 = pnand %p1326_p0, %p1323_p13 }
 0x503   :  { %1331 = shalt.err (!%p1328_p1)
}
 0x504   :  { %834 = dma.vmem_to_hbm [thread:$0]  %s832_s30, 128, %s1641_s13, [#allocation4]  }
 0x505   :  { %1342 = dma.done.wait [#allocation4], 128  }
 0x506   :  { %1343 = vsyncadd [#allocation4], 4294967168 }
 0x507   :  { %838 = vsyncpa [#allocation3], 1 }
 0x508   :  { %839 = vsyncpa [#allocation6], 1 }
 0x509   :  { %840 = vsyncpa [#allocation9], 1 }
 0x50a   :  { %841 = vsyncpa [#allocation12], 1 }
 0x50b   :  { %842 = vsyncpa [#allocation15], 1 }
 0x50c   :  { %843 = vsyncpa [#allocation4], 1 }

</bundles_post_ra>
